<compile_context>
chip_gen: v6e
topology: v6e:2x2x1
jax: 0.10.0
libtpu: 0.0.40
codegen_flags: <defaults>
</compile_context>

<pallas_src>
import jax
import jax.numpy as jnp
from jax import lax
from jax.experimental import pallas as pl
from jax.experimental.pallas import tpu as pltpu


def _mlp_kernel(x_ref, w_ref, b_ref, y_ref):
    # x_ref : (Bt, P)  input dtype (cast to compute dtype here, not in the wrapper)
    # w_ref : (P, P)   compute dtype, pre-transposed to (P_in, P_out)
    # b_ref : (1, P)   float32
    # y_ref : (Bt, P)  float32 (lane-dense; quantile broadcast happens outside)
    x = x_ref[...].astype(w_ref.dtype)
    y = lax.dot_general(
        x, w_ref[...],
        dimension_numbers=(((1,), (0,)), ((), ())),   # (M,K) x (K,N) -> no transpose at all
        preferred_element_type=jnp.float32,           # f32 accumulate on the bf16 MXU
    )
    y_ref[...] = y + b_ref[...]


def prepare_params(weight, bias, compute_dtype=jnp.bfloat16):
    """One-time parameter prep (paid at model setup, not per forward call).

    weight: (P_out, P_in) PyTorch nn.Linear layout; bias: (P,).
    Returns (w_t, b2d): w_t (P_in, P_out) in compute_dtype, b2d (1, P) float32.
    """
    w_t = jnp.asarray(weight).T.astype(compute_dtype)            # (P_in, P_out)
    b2d = jnp.asarray(bias).astype(jnp.float32).reshape(1, -1)   # (1, P)
    return w_t, b2d


# Above this batch size, switch to a batch-tiled grid so v7x's 2 TensorCores can
# split the work (no effect on v5e/v6e, which have 1 TC). Must stay a multiple of 8.
_B_BLOCK = 512


def mlp_forward(x_future, w_t, b2d, num_quantiles):
    """x_future: (B, P, 1) like the torch 'future' tensor (any float dtype).

    w_t, b2d: outputs of prepare_params.
    Returns (B, P, Q) float32, identical prediction replicated over the quantile axis.
    """
    x2d = jnp.squeeze(x_future, axis=-1)      # (B, P); dtype cast happens inside the kernel
    B, P = x2d.shape

    if B >= 2 * _B_BLOCK and B % _B_BLOCK == 0:
        # Batch-tiled, core-parallel path for large fused batches.
        # TODO(synk): if P ever reaches the low thousands, add a K-tiled grid with an
        # f32 accumulator scratch and re-derive tiles against v7x's 64 MiB VMEM
        # (32 MiB scoped default), not v6e's 128 MiB.
        y = pl.pallas_call(
            _mlp_kernel,
            out_shape=jax.ShapeDtypeStruct((B, P), jnp.float32),
            grid=(B // _B_BLOCK,),
            in_specs=[
                pl.BlockSpec((_B_BLOCK, P), lambda i: (i, 0)),
                pl.BlockSpec((P, P), lambda i: (0, 0)),
                pl.BlockSpec((1, P), lambda i: (0, 0)),
            ],
            out_specs=pl.BlockSpec((_B_BLOCK, P), lambda i: (i, 0)),
            compiler_params=pltpu.CompilerParams(
                dimension_semantics=("parallel",)),
        )(x2d, w_t, b2d)
    else:
        # Grid-free invocation: whole arrays resident in VMEM, no pipeline harness.
        y = pl.pallas_call(
            _mlp_kernel,
            out_shape=jax.ShapeDtypeStruct((B, P), jnp.float32),
            in_specs=[
                pl.BlockSpec(memory_space=pltpu.MemorySpace.VMEM),
                pl.BlockSpec(memory_space=pltpu.MemorySpace.VMEM),
                pl.BlockSpec(memory_space=pltpu.MemorySpace.VMEM),
            ],
            out_specs=pl.BlockSpec(memory_space=pltpu.MemorySpace.VMEM),
        )(x2d, w_t, b2d)

    # Exact replication over the quantile axis — pure layout work, done by XLA
    # outside the kernel so the kernel's stores stay lane-dense.
    return jnp.broadcast_to(y[:, :, None], (B, P, num_quantiles))


if __name__ == "__main__":
    # Module hyper-parameters (small, consistent with the forward pass).
    num_historic_features = 4
    num_future_features = 1
    historic_sequence_length = 16
    prediction_horizon_length = 8
    quantiles = (0.1, 0.5, 0.9)

    B = 8                                   # sublane-full batch per perf review
    P = prediction_horizon_length
    Q = len(quantiles)

    key = jax.random.PRNGKey(0)
    k_x, k_w, k_b = jax.random.split(key, 3)

    # Deterministic parameter init (nn.Linear(P, P) shapes: weight (P, P), bias (P,)).
    bound = 1.0 / jnp.sqrt(jnp.float32(P))
    weight = jax.random.uniform(k_w, (P, P), jnp.float32, -bound, bound)
    bias = jax.random.uniform(k_b, (P,), jnp.float32, -bound, bound)

    # One-time parameter prep (transpose + bf16 cast paid at setup, not per call).
    w_t, b2d = prepare_params(weight, bias, compute_dtype=jnp.bfloat16)

    # x['future'] tensor: (B, prediction_horizon_length, 1)
    x_future = jax.random.normal(k_x, (B, P, 1), jnp.float32)

    out = mlp_forward(x_future, w_t, b2d, Q)
    out = jax.block_until_ready(out)
    assert out.shape == (B, P, Q)

    # Tight check against a reference that mirrors the kernel's bf16 operands.
    x2d = jnp.squeeze(x_future, -1)
    y_bf16_ref = jnp.dot(
        x2d.astype(jnp.bfloat16), weight.T.astype(jnp.bfloat16),
        preferred_element_type=jnp.float32) + bias
    ref_bf16 = jnp.broadcast_to(y_bf16_ref[:, :, None], (B, P, Q))
    assert jnp.allclose(out, ref_bf16, atol=1e-5, rtol=1e-5)

    # Loose check against the original f32 module semantics (bf16 rounding only).
    y_f32_ref = x2d @ weight.T + bias
    ref_f32 = jnp.broadcast_to(y_f32_ref[:, :, None], (B, P, Q))
    assert jnp.allclose(out, ref_f32, atol=5e-2, rtol=5e-2)

    print("KERNEL_OK")
</pallas_src>

<mosaic_0001>
module attributes {stable_mosaic.version = 11 : i64} {
  func.func @_mlp_kernel(%arg0: memref<8x8xf32, #tpu.memory_space<vmem>>, %arg1: memref<8x8xbf16, #tpu.memory_space<vmem>>, %arg2: memref<1x8xf32, #tpu.memory_space<vmem>>, %arg3: memref<8x8xf32, #tpu.memory_space<vmem>>) attributes {dimension_semantics = [], scalar_prefetch = 0 : i64, scratch_operands = 0 : i64, tpu.core_type = #tpu.core_type<tc>} {
    %c0 = arith.constant 0 : index
    %c0_0 = arith.constant 0 : index
    %0 = vector.load %arg0[%c0, %c0_0] : memref<8x8xf32, #tpu.memory_space<vmem>>, vector<8x8xf32>
    %1 = arith.truncf %0 : vector<8x8xf32> to vector<8x8xbf16>
    %c0_1 = arith.constant 0 : index
    %c0_2 = arith.constant 0 : index
    %2 = vector.load %arg1[%c0_1, %c0_2] : memref<8x8xbf16, #tpu.memory_space<vmem>>, vector<8x8xbf16>
    %cst = arith.constant dense<0.000000e+00> : vector<8x8xf32>
    %3 = tpu.matmul %1, %2, %cst {dimension_numbers = #tpu.dot_dimension_numbers<[1], [0], [0], [1], [0, 0, 1, 1], [], []>} : vector<8x8xbf16>, vector<8x8xbf16>, vector<8x8xf32> -> vector<8x8xf32>
    %c0_3 = arith.constant 0 : index
    %c0_4 = arith.constant 0 : index
    %4 = vector.load %arg2[%c0_3, %c0_4] : memref<1x8xf32, #tpu.memory_space<vmem>>, vector<1x8xf32>
    %5 = vector.broadcast %4 : vector<1x8xf32> to vector<8x8xf32>
    %6 = arith.addf %3, %5 : vector<8x8xf32>
    %c0_5 = arith.constant 0 : index
    %c0_6 = arith.constant 0 : index
    %7 = vector.load %arg3[%c0_5, %c0_6] : memref<8x8xf32, #tpu.memory_space<vmem>>, vector<8x8xf32>
    tpu.vector_store %arg3[%c0_5, %c0_6], %6 {strides = array<i32>} : memref<8x8xf32, #tpu.memory_space<vmem>>, vector<8x8xf32>,
    return
  }
}

</mosaic_0001>

<bundles_post_ra>
// kernel: tpu_custom_call.1
= control target key start
LH: loop header
LB: loop body
LE: loop exit
PB: predicated region body
PF: predicated region fallthrough
CT: control target
= control target key end

     0   :  { %8 = vsyncpa [#allocation3], 0  ;;  %s233_s0 = inlined_call_operand.hbm [shape: f32[8,8], index: 0, kind: input, shape index: {}]   ;;  %s234_s1 = inlined_call_operand.hbm [shape: bf16[8,8], index: 1, kind: input, shape index: {}]   ;;  %s235_s2 = inlined_call_operand.vmem [shape: f32[1,8], index: 2, kind: input, shape index: {}]   ;;  %s236_s3 = inlined_call_operand.hbm [shape: f32[8,8], index: 3, kind: output, shape index: {}]  }
   0x1   :  { %9 = vsyncpa [#allocation6], 0 }
   0x2   :  { %10 = vsyncpa [#allocation4], 0  ;;  %s196_s12 = smov [#allocation2]   ;;  %s197_s14 = smov [#allocation5]  }
   0x3   :  { %s17_s13 = sshll.u32 %s196_s12, 4  ;;  %s27_s15 = sshll.u32 %s197_s14, 4  ;;  %s18_s13 = int_to_ptr.vmem [resolvable:$true] %s17_s13  ;;  %s28_s15 = int_to_ptr.vmem [resolvable:$true] %s27_s15 }
   0x4   :  { %s138_s16 = scalar_lea.vmem %s18_s13, 128  ;;  %p143_p1 = scmp.lt.s32.totalorder %s18_s13, %s18_s13 }
   0x5   :  { %p139_p0 = scmp.ne.s32.totalorder %s18_s13, %s138_s16  ;;  %p144_p2 = scmp.lt.s32.totalorder %s138_s16, %s138_s16 }
   0x7   :  { %p145_p3 = por %p144_p2, %p143_p1 }
   0x9   :  { %p146_p4 = pnand %p145_p3, %p139_p0 }
   0xb   :  { %149 = shalt.err (!%p146_p4)
}
   0xc   :  { %20 = dma.hbm_to_vmem [thread:$0]  %s233_s0, 128, %s18_s13, [#allocation3]  }
   0xd   :  { %s158_s19 = scalar_lea.vmem %s28_s15, 64  ;;  %p163_p6 = scmp.lt.s32.totalorder %s28_s15, %s28_s15 }
   0xe   :  { %p159_p5 = scmp.ne.s32.totalorder %s28_s15, %s158_s19  ;;  %p164_p7 = scmp.lt.s32.totalorder %s158_s19, %s158_s19 }
  0x10   :  { %p165_p8 = por %p164_p7, %p163_p6 }
  0x12   :  { %p166_p9 = pnand %p165_p8, %p159_p5 }
  0x14   :  { %169 = shalt.err (!%p166_p9)
}
  0x15   :  { %30 = dma.hbm_to_vmem [thread:$0]  %s234_s1, 64, %s28_s15, [#allocation6]  }
  0x16   :  { %190 = dma.done.wait [#allocation3], 128  }
  0x17   :  { %191 = vsyncadd [#allocation3], 4294967168 }
  0x18   :  { %192 = dma.done.wait [#allocation6], 64  }
  0x19   :  { %193 = vsyncadd [#allocation6], 4294967232  ;;  %v198_v0 = vmov 0.0   ;;  %vm199_vm0 = vmmov 0   ;;  %vm54_vm1 = vcmask 1043456   ;;  %v40_v2 = vld [vmem:[#allocation2] sm:$0xff] }
  0x1a   :  { %119 = vmatprep.subr.bf16.mxu0 %v198_v0  ;;  %121 = vmatprep.mubr.msk.bf16.mxu0 %vm199_vm0, %v198_v0  ;;  %v42_v1 = vld [vmem:[#allocation5] sm:$0xf]  ;;  %v41_v4 = vpack.c.bf16 %v40_v2, %v40_v2  ;;  %vm50_vm2 = vcmask 64512   ;;  %v115_v5 = vld [vmem:[%s235_s2] ss:$0 sm:$0xff]  ;;  %s200_s1 = smov [#allocation7]  }
  0x1b   :  { %v56_v3 = vsel %vm54_vm1, %v42_v1, 0  ;;  %s105_s23 = sshll.u32 %s200_s1, 4  ;;  %s106_s23 = int_to_ptr.vmem [resolvable:$true] %s105_s23 }
  0x1c   :  { %120 = vmatpush3.bf16.msra.mxu0 %v56_v3  ;;  %s170_s24 = scalar_lea.vmem %s106_s23, 128  ;;  %p175_p11 = scmp.lt.s32.totalorder %s106_s23, %s106_s23 }
  0x1d   :  { %p171_p10 = scmp.ne.s32.totalorder %s106_s23, %s170_s24  ;;  %p176_p12 = scmp.lt.s32.totalorder %s170_s24, %s170_s24 }
  0x1f   :  { %122 = vmatmul.mubr.msk.bf16.vlgmr.msra.gmra.mxu0 %vm50_vm2, %v41_v4  ;;  %p177_p13 = por %p176_p12, %p175_p11 }
  0x21   :  { %p178_p0 = pnand %p177_p13, %p171_p10 }
  0xdf   :  { %v92_v6 = vpop.f32.mrf.mxu0 }
  0xe0   :  { %v93_v7 = vadd.f32 %v115_v5, %v92_v6 }
  0xe1   :  { %v123_v8 = vpop.f32.mrf.mxu0 }
  0xe2   :  { %98 = vst.msk [vmem:[#allocation7] sm:$0xff] %vm50_vm2, %v93_v7 }
  0xe3   :  { %v95_v9 = vpop.f32.mrf.mxu0 }
  0xe4   :  { %181 = shalt.err (!%p178_p0)
}
  0xe5   :  { %108 = dma.vmem_to_hbm [thread:$0]  %s106_s23, 128, %s236_s3, [#allocation4]   ;;  %v124_v10 = vpop.f32.mrf.mxu0 }
  0xe6   :  { %194 = dma.done.wait [#allocation4], 128  }
  0xe7   :  { %195 = vsyncadd [#allocation4], 4294967168 }
  0xe8   :  { %112 = vsyncpa [#allocation3], 1 }
  0xe9   :  { %113 = vsyncpa [#allocation6], 1 }
  0xea   :  { %114 = vsyncpa [#allocation4], 1 }

</bundles_post_ra>
